<compile_context>
chip_gen: v5e
topology: v5e:2x2
jax: 0.10.0
libtpu: 0.0.40
codegen_flags: <defaults>
</compile_context>

<pallas_src>
from functools import partial

import jax
import jax.numpy as jnp
from jax.experimental import pallas as pl
from jax.experimental.pallas import tpu as pltpu

_LANES = 128                          # vreg lane width (v5e / v6e / v7x)
_TARGET_BLOCK_BYTES = 4 * 1024 * 1024  # ~4 MiB per block (8192 f32 rows)
_VMEM_LIMIT_BYTES = 32 * 1024 * 1024   # 2 bufs x (in+out) x 4 MiB = 16 MiB << limit


def _copy_kernel(x_ref, o_ref):
    # Whole-tile VMEM load/store — the entirety of the (undefined) forward.
    o_ref[...] = x_ref[...]


def _tiled_identity_copy(x2d: jax.Array) -> jax.Array:
    """Lane-dense, tiled, aliased HBM->VMEM->HBM identity copy."""
    rows, lanes = x2d.shape
    itemsize = jnp.dtype(x2d.dtype).itemsize

    # ~4 MiB blocks: big enough that DMA time dominates the ~0.35 us per-step
    # overhead on every chip generation; always a multiple of 8 sublanes.
    max_tile_rows = max(8, _TARGET_BLOCK_BYTES // (lanes * itemsize))
    tile_rows = rows if rows <= max_tile_rows else max_tile_rows
    grid = (pl.cdiv(rows, tile_rows),)

    return pl.pallas_call(
        _copy_kernel,
        out_shape=jax.ShapeDtypeStruct((rows, lanes), x2d.dtype),
        grid=grid,
        in_specs=[pl.BlockSpec((tile_rows, lanes), lambda i: (i, 0))],
        out_specs=pl.BlockSpec((tile_rows, lanes), lambda i: (i, 0)),
        # Pure identity: alias the output onto the input HBM buffer (P8).
        input_output_aliases={0: 0},
        cost_estimate=pl.CostEstimate(
            flops=0,
            transcendentals=0,
            bytes_accessed=2 * rows * lanes * itemsize,
        ),
        compiler_params=pltpu.CompilerParams(
            dimension_semantics=("parallel",),      # megacore sharding on v7x
            vmem_limit_bytes=_VMEM_LIMIT_BYTES,     # safe headroom incl. v5e
        ),
    )(x2d)


@partial(jax.jit, donate_argnums=(0,))
def domain_specific_forward(x: jax.Array) -> jax.Array:
    """Pallas stand-in for DomainSpecific.forward (which is NotImplemented)."""
    orig_shape = x.shape
    n = x.size

    if n % _LANES == 0:
        # Lane-dense layout: last dim exactly 128 -> fully unmasked stores.
        y2d = _tiled_identity_copy(x.reshape(n // _LANES, _LANES))
        return y2d.reshape(orig_shape)

    # Fallback: pad the flat array up to a multiple of 128 lanes, run the same
    # tiled lane-dense copy, then slice the padding back off.  (Never places
    # the whole array in a single VMEM block.)
    rows = pl.cdiv(n, _LANES)
    padded = jnp.pad(x.reshape(n), (0, rows * _LANES - n))
    y2d = _tiled_identity_copy(padded.reshape(rows, _LANES))
    return y2d.reshape(rows * _LANES)[:n].reshape(orig_shape)


if __name__ == "__main__":
    key = jax.random.PRNGKey(0)
    # Small NCHW input consistent with an image-agent module: B=2, C=4, 16x16.
    shape = (2, 4, 16, 16)
    x = jax.random.normal(key, shape, dtype=jnp.float32)

    y = domain_specific_forward(x)          # x is donated (real in-place alias)
    jax.block_until_ready(y)

    # x was donated — regenerate the deterministic reference for comparison.
    x_ref = jax.random.normal(key, shape, dtype=jnp.float32)

    # Sanity check: bit-exact identity (the only well-defined behavior here).
    assert y.shape == x_ref.shape and y.dtype == x_ref.dtype
    assert bool(jnp.array_equal(y, x_ref))

    print("KERNEL_OK")
</pallas_src>

<mosaic_0001>
module attributes {stable_mosaic.version = 11 : i64} {
  func.func @_copy_kernel(%arg0: i32, %arg1: memref<16x128xf32, #tpu.memory_space<vmem>>, %arg2: memref<16x128xf32, #tpu.memory_space<vmem>>) attributes {dimension_semantics = [#tpu.dimension_semantics<parallel>], iteration_bounds = array<i64: 1>, scalar_prefetch = 0 : i64, scratch_operands = 0 : i64, tpu.core_type = #tpu.core_type<tc>, window_params = [{transform_indices = @transform_0, window_bounds = array<i64: 16, 128>}, {transform_indices = @transform_1, window_bounds = array<i64: 16, 128>}]} {
    %c0 = arith.constant 0 : index
    %c0_0 = arith.constant 0 : index
    %0 = vector.load %arg1[%c0, %c0_0] : memref<16x128xf32, #tpu.memory_space<vmem>>, vector<16x128xf32>
    %c0_1 = arith.constant 0 : index
    %c0_2 = arith.constant 0 : index
    %1 = vector.load %arg2[%c0_1, %c0_2] : memref<16x128xf32, #tpu.memory_space<vmem>>, vector<16x128xf32>
    tpu.vector_store %arg2[%c0_1, %c0_2], %0 {strides = array<i32>} : memref<16x128xf32, #tpu.memory_space<vmem>>, vector<16x128xf32>,
    return
  }
  func.func @transform_0(%arg0: i32) -> (i32, i32) {
    %c0_i32 = arith.constant 0 : i32
    %c0_i32_0 = arith.constant 0 : i32
    return %arg0, %c0_i32 : i32, i32
  }
  func.func @transform_1(%arg0: i32) -> (i32, i32) {
    %c0_i32 = arith.constant 0 : i32
    %c0_i32_0 = arith.constant 0 : i32
    return %arg0, %c0_i32 : i32, i32
  }
}

</mosaic_0001>

<bundles_post_ra>
// kernel: domain_specific_forward.1
= control target key start
LH: loop header
LB: loop body
LE: loop exit
PB: predicated region body
PF: predicated region fallthrough
CT: control target
= control target key end

     0   :  { %s38_s0 = inlined_call_operand.vmem [shape: f32[16,128], index: 0, kind: input, shape index: {}, may-alias: {0,1}]   ;;  %s39_s1 = inlined_call_operand.vmem [shape: f32[16,128], index: 1, kind: output, shape index: {}, may-alias: {0,1}]  }
   0x1   :  { %v8_v0 = vld [vmem:[%s38_s0] sm:$0xff]  ;;  %v9_v1 = vld [vmem:[%s38_s0 + $0x8] sm:$0xff] }
   0x2   :  { %10 = vst [vmem:[%s39_s1] sm:$0xff] %v8_v0 }
   0x3   :  { %11 = vst [vmem:[%s39_s1 + $0x8] sm:$0xff] %v9_v1 }

</bundles_post_ra>
